<compile_context>
chip_gen: v7x
topology: tpu7x:2x2x1
jax: 0.10.0
libtpu: 0.0.40
codegen_flags: <defaults>
</compile_context>

<pallas_src>
import functools
import math

import jax
import jax.numpy as jnp
from jax.experimental import pallas as pl
from jax.experimental.pallas import tpu as pltpu


def _eca_kernel_size(channels, gamma=2, b=1):
    k = int(abs((math.log(channels, 2) + b) / gamma))
    return k if k % 2 else k + 1


def _accumulate_tile(x_ref, acc_ref, *, t_hw, valid):
    """Accumulate one (B_T, C, t_hw) input tile into the (B_T, C, 128) f32 accumulator.

    Pure element-wise (VALU-only) adds over 128-lane chunks — no cross-lane reduce and
    no relayout in the hot loop.  `valid` (static int) is the number of in-bounds lanes
    in this tile; lanes >= valid are out-of-bounds garbage and are masked to zero.
    """
    n_full = t_hw // 128
    rem = t_hw - n_full * 128

    if n_full:
        acc = acc_ref[...]
        for j in range(n_full):
            lo = j * 128
            v = valid - lo
            if v <= 0:
                break                                   # rest of the tile is out of bounds
            chunk = x_ref[:, :, lo:lo + 128].astype(jnp.float32)
            if v < 128:                                 # only on the final overhanging tile
                lane = jax.lax.broadcasted_iota(jnp.int32, (1, 1, 128), 2)
                chunk = jnp.where(lane < v, chunk, 0.0)
            acc = acc + chunk
        acc_ref[...] = acc

    if rem and valid > n_full * 128:
        # Ragged full-dim tile (only when H*W < 128): one partial-lane add, runs once
        # per batch tile, so the masked read-modify-write cost is irrelevant.
        r = min(rem, valid - n_full * 128)
        lo = n_full * 128
        acc_ref[:, :, :r] = acc_ref[:, :, :r] + x_ref[:, :, lo:lo + r].astype(jnp.float32)


def _eca_kernel(w_ref, x_ref, o_ref, acc_ref, conv_ref, *, k_taps, pad, n_ch, t_hw, tail):
    """One grid step of the ECA forward pass.

    w_ref    : (k,) f32 SMEM           -- Conv1d taps, pre-scaled by 1/(H*W)
    x_ref    : (B_T, C, T_HW)          -- input tile (C on sublanes, H*W on lanes)
    o_ref    : (B_T, 1, C)             -- sigmoid attention weights (written on last step)
    acc_ref  : (B_T, C, 128) f32 VMEM  -- per-lane partial sums (hot loop is VALU-only)
    conv_ref : (B_T, C_pad) f32 VMEM   -- pooled sums with C on lanes, zero padded lanes
    """
    s = pl.program_id(1)
    n_s = pl.num_programs(1)

    @pl.when(s == 0)
    def _init():
        acc_ref[...] = jnp.zeros_like(acc_ref)

    if tail == 0:
        _accumulate_tile(x_ref, acc_ref, t_hw=t_hw, valid=t_hw)
    else:
        # H*W is not a multiple of T_HW: the last block overhangs the array and its
        # trailing lanes hold garbage (Pallas does not zero out-of-bounds data), so the
        # final step masks them.  Every other step runs the unmasked hot loop.
        @pl.when(s < n_s - 1)
        def _full_tile():
            _accumulate_tile(x_ref, acc_ref, t_hw=t_hw, valid=t_hw)

        @pl.when(s == n_s - 1)
        def _tail_tile():
            _accumulate_tile(x_ref, acc_ref, t_hw=t_hw, valid=tail)

    @pl.when(s == n_s - 1)
    def _finalize():
        c_pad = conv_ref.shape[-1]
        # Single cross-lane reduce + relayout (C moves from sublanes to lanes), once per
        # batch tile.  Lanes [n_ch, c_pad) are zeroed here and never written again --
        # they provide the Conv1d zero padding when a circular roll wraps around.
        conv_ref[...] = jnp.zeros_like(conv_ref)
        conv_ref[:, :n_ch] = jnp.sum(acc_ref[...], axis=-1)
        pooled = conv_ref[...]                                           # (B_T, C_pad)

        # k-tap channel conv as k weighted lane rotations (no (C, C) matrix):
        #   conv[c] = sum_m w[m] * pooled[c + m - pad]   (zero padded outside [0, C))
        # relies on pltpu.roll's out[i] = in[(i - shift) mod c_pad] convention.
        conv = None
        for m in range(k_taps):                                          # k in {3,5,7}: static
            shift = (pad - m) % c_pad
            tap = pooled if shift == 0 else pltpu.roll(pooled, shift, axis=1)
            term = tap * w_ref[m]
            conv = term if conv is None else conv + term

        o_ref[...] = jax.nn.sigmoid(conv[:, :n_ch]).astype(o_ref.dtype)[:, None, :]


def _choose_batch_tile(B, C, itemsize, per_buf_budget, min_lanes=512):
    """Largest divisor of B that (a) leaves >= 2 batch tiles (v7x megacore) and
    (b) keeps the spatial tile >= min_lanes lanes within the per-buffer budget."""
    if B <= 1:
        return 1
    best = 1
    for d in range(1, B // 2 + 1):
        if B % d == 0 and d * C * itemsize * min_lanes <= per_buf_budget:
            best = d
    return best


def eca_block(x, conv_w, *, spatial_tile=None, batch_tile=None):
    """ECA forward. x: (B, C, H, W) NCHW.  conv_w: (1, 1, k) Conv1d weight (no bias).
    Returns sigmoid channel-attention weights of shape (B, C, 1, 1)."""
    B, C, H, W = x.shape
    HW = H * W
    k = conv_w.shape[-1]
    pad = (k - 1) // 2
    itemsize = x.dtype.itemsize

    per_buf_budget = 8 * 1024 * 1024                   # per double-buffered input block

    # ---- batch tiling (grid axis 0, "parallel" -> megacore sharding on v7x) ------
    if batch_tile is not None:
        assert B % batch_tile == 0, "batch_tile must divide B"
        B_T = batch_tile
    else:
        B_T = _choose_batch_tile(B, C, itemsize, per_buf_budget)
    n_b = B // B_T

    # ---- spatial tiling (grid axis 1, the pooled reduction, "arbitrary") ---------
    if HW < 128:
        T_HW = HW                                      # single full-dim (ragged) tile
    else:
        hw_cap = (HW // 128) * 128                     # keep block dim <= array dim
        if spatial_tile is not None:
            assert spatial_tile % 128 == 0, "spatial_tile must be a multiple of 128"
            T_HW = min(spatial_tile, hw_cap)
        else:
            lanes = per_buf_budget // max(1, B_T * C * itemsize)
            T_HW = max(128, min(8192, (lanes // 128) * 128))
            T_HW = min(T_HW, hw_cap)
    n_hw = -(-HW // T_HW)
    tail = HW % T_HW            # valid lanes of the last (overhanging) tile; 0 if aligned

    x_flat = x.reshape(B, C, HW)                       # metadata-only reshape; NO jnp.pad copy

    # Conv buffer channel width: lane aligned and >= C + pad so circular rolls only
    # ever wrap into zero lanes.
    C_pad = ((C + pad + 127) // 128) * 128

    # Fold the 1/(H*W) mean into the conv taps; keep taps as SMEM scalars.
    w_scaled = conv_w.reshape(k).astype(jnp.float32) / float(HW)

    kernel = functools.partial(_eca_kernel, k_taps=k, pad=pad, n_ch=C, t_hw=T_HW, tail=tail)

    x_block_bytes = B_T * C * T_HW * itemsize
    scratch_bytes = (B_T * C * 128 + B_T * C_pad) * 4
    # Cap at 48 MiB so the request always leaves headroom on v7x's 64 MiB VMEM.
    vmem_limit = int(min(48 * 1024 * 1024,
                         max(32 * 1024 * 1024, 3 * x_block_bytes + scratch_bytes + (1 << 20))))

    out = pl.pallas_call(
        kernel,
        out_shape=jax.ShapeDtypeStruct((B, 1, C), x.dtype),
        grid=(n_b, n_hw),
        in_specs=[
            pl.BlockSpec(memory_space=pltpu.MemorySpace.SMEM),        # conv taps (k,)
            pl.BlockSpec((B_T, C, T_HW), lambda b, s: (b, 0, s)),     # input tile
        ],
        out_specs=pl.BlockSpec((B_T, 1, C), lambda b, s: (b, 0, 0)),
        scratch_shapes=[
            pltpu.VMEM((B_T, C, 128), jnp.float32),                   # pooled-sum accumulator
            pltpu.VMEM((B_T, C_pad), jnp.float32),                    # channels-on-lanes conv buffer
        ],
        compiler_params=pltpu.CompilerParams(
            dimension_semantics=("parallel", "arbitrary"),
            vmem_limit_bytes=vmem_limit,
        ),
        cost_estimate=pl.CostEstimate(
            flops=int(B * C * HW + 2 * B * C * k),
            bytes_accessed=int(B * C * HW * itemsize + B * C * itemsize + k * 4),
            transcendentals=int(B * C),
        ),
    )(w_scaled, x_flat)

    return out.reshape(B, C, 1, 1)


def _eca_reference(x, conv_w):
    """Independent reference: mean-pool + lax cross-correlation (PyTorch Conv1d
    semantics) + sigmoid."""
    B, C, H, W = x.shape
    k = conv_w.shape[-1]
    p = (k - 1) // 2
    pooled = jnp.mean(x.astype(jnp.float32), axis=(2, 3))             # (B, C)
    conv = jax.lax.conv_general_dilated(
        pooled[:, None, :],                                           # (B, 1, C)
        conv_w.astype(jnp.float32),                                   # (1, 1, k) OIW
        window_strides=(1,),
        padding=[(p, p)],
        dimension_numbers=("NCW", "OIW", "NCW"),
    )[:, 0, :]
    return jax.nn.sigmoid(conv).reshape(B, C, 1, 1)


if __name__ == "__main__":
    key = jax.random.PRNGKey(0)

    def run_case(case_id, B, C, H, W, dtype, spatial_tile, atol):
        k = _eca_kernel_size(C)                                       # C=16 -> k=3
        kx, kw = jax.random.split(jax.random.fold_in(key, case_id))
        x = jax.random.normal(kx, (B, C, H, W), dtype=jnp.float32).astype(dtype)
        bound = 1.0 / math.sqrt(k)                                    # Conv1d init bound
        conv_w = jax.random.uniform(kw, (1, 1, k), dtype=jnp.float32,
                                    minval=-bound, maxval=bound)
        out = jax.block_until_ready(eca_block(x, conv_w, spatial_tile=spatial_tile))
        ref = _eca_reference(x, conv_w)
        assert out.shape == (B, C, 1, 1)
        err = jnp.max(jnp.abs(out.astype(jnp.float32) - ref))
        assert jnp.allclose(out.astype(jnp.float32), ref, atol=atol, rtol=1e-4), (
            f"case {case_id}: max abs err {err}")

    # 1) Default tiling: 2 batch tiles (v7x megacore), whole H*W in one lane-aligned tile.
    run_case(1, 2, 16, 32, 32, jnp.float32, None, 1e-5)
    # 2) 4 spatial grid steps, 2 batch tiles -> init / accumulate / finalize path.
    run_case(2, 4, 16, 32, 32, jnp.float32, 256, 1e-5)
    # 3) bf16 input, H*W = 324 (not a multiple of 128) -> in-kernel tail masking, no pad copy.
    run_case(3, 2, 16, 18, 18, jnp.bfloat16, 128, 1e-2)
    # 4) H*W = 64 < 128 -> single ragged full-dim tile (partial-lane accumulate path).
    run_case(4, 2, 16, 8, 8, jnp.float32, None, 1e-5)

    print("KERNEL_OK")
</pallas_src>

<mosaic_0001>
module attributes {stable_mosaic.version = 11 : i64} {
  func.func @_eca_kernel(%arg0: i32, %arg1: i32, %arg2: memref<3xf32, #tpu.memory_space<smem>>, %arg3: memref<1x16x1024xf32, #tpu.memory_space<vmem>>, %arg4: memref<1x1x16xf32, #tpu.memory_space<vmem>>, %arg5: memref<1x16x128xf32, #tpu.memory_space<vmem>>, %arg6: memref<1x128xf32, #tpu.memory_space<vmem>>) attributes {dimension_semantics = [#tpu.dimension_semantics<parallel>, #tpu.dimension_semantics<arbitrary>], iteration_bounds = array<i64: 2, 1>, scalar_prefetch = 0 : i64, scratch_operands = 2 : i64, tpu.core_type = #tpu.core_type<tc>, window_params = [{transform_indices = @transform_0, window_bounds = array<i64: 3>}, {transform_indices = @transform_1, window_bounds = array<i64: 1, 16, 1024>}, {transform_indices = @transform_2, window_bounds = array<i64: 1, 1, 16>}]} {
    %c0_i32 = arith.constant 0 : i32
    %0 = arith.cmpi eq, %arg1, %c0_i32 : i32
    %1 = arith.extui %0 : i1 to i32
    %c0_i32_0 = arith.constant 0 : i32
    %2 = arith.cmpi ne, %1, %c0_i32_0 : i32
    scf.if %2 {
      %cst = arith.constant 0.000000e+00 : f32
      %24 = vector.broadcast %cst : f32 to vector<1x16x128xf32>
      %c0_25 = arith.constant 0 : index
      %c0_26 = arith.constant 0 : index
      %c0_27 = arith.constant 0 : index
      %25 = vector.load %arg5[%c0_25, %c0_26, %c0_27] : memref<1x16x128xf32, #tpu.memory_space<vmem>>, vector<1x16x128xf32>
      tpu.vector_store %arg5[%c0_25, %c0_26, %c0_27], %24 {strides = array<i32>} : memref<1x16x128xf32, #tpu.memory_space<vmem>>, vector<1x16x128xf32>,
    } else {
    }
    %c0 = arith.constant 0 : index
    %c0_1 = arith.constant 0 : index
    %c0_2 = arith.constant 0 : index
    %3 = vector.load %arg5[%c0, %c0_1, %c0_2] : memref<1x16x128xf32, #tpu.memory_space<vmem>>, vector<1x16x128xf32>
    %c0_3 = arith.constant 0 : index
    %c0_4 = arith.constant 0 : index
    %c0_5 = arith.constant 0 : index
    %4 = vector.load %arg3[%c0_3, %c0_4, %c0_5] : memref<1x16x1024xf32, #tpu.memory_space<vmem>>, vector<1x16x128xf32>
    %5 = arith.addf %3, %4 : vector<1x16x128xf32>
    %c0_6 = arith.constant 0 : index
    %c0_7 = arith.constant 0 : index
    %c128 = arith.constant 128 : index
    %6 = vector.load %arg3[%c0_6, %c0_7, %c128] : memref<1x16x1024xf32, #tpu.memory_space<vmem>>, vector<1x16x128xf32>
    %7 = arith.addf %5, %6 : vector<1x16x128xf32>
    %c0_8 = arith.constant 0 : index
    %c0_9 = arith.constant 0 : index
    %c256 = arith.constant 256 : index
    %8 = vector.load %arg3[%c0_8, %c0_9, %c256] : memref<1x16x1024xf32, #tpu.memory_space<vmem>>, vector<1x16x128xf32>
    %9 = arith.addf %7, %8 : vector<1x16x128xf32>
    %c0_10 = arith.constant 0 : index
    %c0_11 = arith.constant 0 : index
    %c384 = arith.constant 384 : index
    %10 = vector.load %arg3[%c0_10, %c0_11, %c384] : memref<1x16x1024xf32, #tpu.memory_space<vmem>>, vector<1x16x128xf32>
    %11 = arith.addf %9, %10 : vector<1x16x128xf32>
    %c0_12 = arith.constant 0 : index
    %c0_13 = arith.constant 0 : index
    %c512 = arith.constant 512 : index
    %12 = vector.load %arg3[%c0_12, %c0_13, %c512] : memref<1x16x1024xf32, #tpu.memory_space<vmem>>, vector<1x16x128xf32>
    %13 = arith.addf %11, %12 : vector<1x16x128xf32>
    %c0_14 = arith.constant 0 : index
    %c0_15 = arith.constant 0 : index
    %c640 = arith.constant 640 : index
    %14 = vector.load %arg3[%c0_14, %c0_15, %c640] : memref<1x16x1024xf32, #tpu.memory_space<vmem>>, vector<1x16x128xf32>
    %15 = arith.addf %13, %14 : vector<1x16x128xf32>
    %c0_16 = arith.constant 0 : index
    %c0_17 = arith.constant 0 : index
    %c768 = arith.constant 768 : index
    %16 = vector.load %arg3[%c0_16, %c0_17, %c768] : memref<1x16x1024xf32, #tpu.memory_space<vmem>>, vector<1x16x128xf32>
    %17 = arith.addf %15, %16 : vector<1x16x128xf32>
    %c0_18 = arith.constant 0 : index
    %c0_19 = arith.constant 0 : index
    %c896 = arith.constant 896 : index
    %18 = vector.load %arg3[%c0_18, %c0_19, %c896] : memref<1x16x1024xf32, #tpu.memory_space<vmem>>, vector<1x16x128xf32>
    %19 = arith.addf %17, %18 : vector<1x16x128xf32>
    %c0_20 = arith.constant 0 : index
    %c0_21 = arith.constant 0 : index
    %c0_22 = arith.constant 0 : index
    %20 = vector.load %arg5[%c0_20, %c0_21, %c0_22] : memref<1x16x128xf32, #tpu.memory_space<vmem>>, vector<1x16x128xf32>
    tpu.vector_store %arg5[%c0_20, %c0_21, %c0_22], %19 {strides = array<i32>} : memref<1x16x128xf32, #tpu.memory_space<vmem>>, vector<1x16x128xf32>,
    %c0_i32_23 = arith.constant 0 : i32
    %21 = arith.cmpi eq, %arg1, %c0_i32_23 : i32
    %22 = arith.extui %21 : i1 to i32
    %c0_i32_24 = arith.constant 0 : i32
    %23 = arith.cmpi ne, %22, %c0_i32_24 : i32
    scf.if %23 {
      %cst = arith.constant 0.000000e+00 : f32
      %24 = vector.broadcast %cst : f32 to vector<1x128xf32>
      %c0_25 = arith.constant 0 : index
      %c0_26 = arith.constant 0 : index
      %25 = vector.load %arg6[%c0_25, %c0_26] : memref<1x128xf32, #tpu.memory_space<vmem>>, vector<1x128xf32>
      tpu.vector_store %arg6[%c0_25, %c0_26], %24 {strides = array<i32>} : memref<1x128xf32, #tpu.memory_space<vmem>>, vector<1x128xf32>,
      %c0_27 = arith.constant 0 : index
      %c0_28 = arith.constant 0 : index
      %c0_29 = arith.constant 0 : index
      %26 = vector.load %arg5[%c0_27, %c0_28, %c0_29] : memref<1x16x128xf32, #tpu.memory_space<vmem>>, vector<1x16x128xf32>
      %cst_30 = arith.constant dense<0.000000e+00> : vector<1x16xf32>
      %27 = vector.multi_reduction <add>, %26, %cst_30 [2] : vector<1x16x128xf32> to vector<1x16xf32>
      %c0_31 = arith.constant 0 : index
      %c0_32 = arith.constant 0 : index
      %28 = vector.load %arg6[%c0_31, %c0_32] : memref<1x128xf32, #tpu.memory_space<vmem>>, vector<1x16xf32>
      tpu.vector_store %arg6[%c0_31, %c0_32], %27 {strides = array<i32>} : memref<1x128xf32, #tpu.memory_space<vmem>>, vector<1x16xf32>,
      %c0_33 = arith.constant 0 : index
      %c0_34 = arith.constant 0 : index
      %29 = vector.load %arg6[%c0_33, %c0_34] : memref<1x128xf32, #tpu.memory_space<vmem>>, vector<1x128xf32>
      %c1_i32 = arith.constant 1 : i32
      %30 = tpu.dynamic_rotate %29 by %c1_i32 dim 1 : vector<1x128xf32>, i32 -> vector<1x128xf32>
      %c0_35 = arith.constant 0 : index
      %31 = memref.load %arg2[%c0_35] : memref<3xf32, #tpu.memory_space<smem>>
      %32 = vector.broadcast %31 : f32 to vector<1x128xf32>
      %33 = arith.mulf %30, %32 : vector<1x128xf32>
      %c1 = arith.constant 1 : index
      %34 = memref.load %arg2[%c1] : memref<3xf32, #tpu.memory_space<smem>>
      %35 = vector.broadcast %34 : f32 to vector<1x128xf32>
      %36 = arith.mulf %29, %35 : vector<1x128xf32>
      %37 = arith.addf %33, %36 : vector<1x128xf32>
      %c127_i32 = arith.constant 127 : i32
      %38 = tpu.dynamic_rotate %29 by %c127_i32 dim 1 : vector<1x128xf32>, i32 -> vector<1x128xf32>
      %c2 = arith.constant 2 : index
      %39 = memref.load %arg2[%c2] : memref<3xf32, #tpu.memory_space<smem>>
      %40 = vector.broadcast %39 : f32 to vector<1x128xf32>
      %41 = arith.mulf %38, %40 : vector<1x128xf32>
      %42 = arith.addf %37, %41 : vector<1x128xf32>
      %43 = vector.extract_strided_slice %42 {offsets = [0, 0], sizes = [1, 16], strides = [1, 1]} : vector<1x128xf32> to vector<1x16xf32>
      %44 = arith.negf %43 : vector<1x16xf32>
      %45 = math.exp %44 : vector<1x16xf32>
      %cst_36 = arith.constant 1.000000e+00 : f32
      %46 = vector.broadcast %cst_36 : f32 to vector<1x16xf32>
      %47 = arith.addf %46, %45 : vector<1x16xf32>
      %48 = arith.divf %46, %47 : vector<1x16xf32>
      %49 = vector.shape_cast %48 : vector<1x16xf32> to vector<1x1x16xf32>
      %c0_37 = arith.constant 0 : index
      %c0_38 = arith.constant 0 : index
      %c0_39 = arith.constant 0 : index
      %50 = vector.load %arg4[%c0_37, %c0_38, %c0_39] : memref<1x1x16xf32, #tpu.memory_space<vmem>>, vector<1x1x16xf32>
      tpu.vector_store %arg4[%c0_37, %c0_38, %c0_39], %49 {strides = array<i32>} : memref<1x1x16xf32, #tpu.memory_space<vmem>>, vector<1x1x16xf32>,
    } else {
    }
    return
  }
  func.func @transform_0(%arg0: i32, %arg1: i32) -> i32 {
    %c0_i32 = arith.constant 0 : i32
    %c0_i32_0 = arith.constant 0 : i32
    return %c0_i32 : i32
  }
  func.func @transform_1(%arg0: i32, %arg1: i32) -> (i32, i32, i32) {
    %c0_i32 = arith.constant 0 : i32
    %c0_i32_0 = arith.constant 0 : i32
    return %arg0, %c0_i32, %arg1 : i32, i32, i32
  }
  func.func @transform_2(%arg0: i32, %arg1: i32) -> (i32, i32, i32) {
    %c0_i32 = arith.constant 0 : i32
    %c0_i32_0 = arith.constant 0 : i32
    %c0_i32_1 = arith.constant 0 : i32
    return %arg0, %c0_i32, %c0_i32_0 : i32, i32, i32
  }
}

</mosaic_0001>

<bundles_post_ra>
// kernel: tpu_custom_call.1
= control target key start
LH: loop header
LB: loop body
LE: loop exit
PB: predicated region body
PF: predicated region fallthrough
CT: control target
= control target key end

     0   :  { %7 = vsyncpa [#allocation7], 0  ;;  %s859_s0 = inlined_call_operand.hbm [shape: f32[3], index: 0, kind: input, shape index: {}]   ;;  %s860_s1 = inlined_call_operand.hbm [shape: f32[2,16,1024], index: 1, kind: input, shape index: {}]   ;;  %s861_s2 = inlined_call_operand.hbm [shape: f32[2,1,16], index: 2, kind: output, shape index: {}]  }
   0x1   :  { %8 = vsyncpa [#allocation5], 0 }
   0x2   :  { %10 = vsyncpa [#allocation5 + $0x1], 0 }
   0x3   :  { %11 = vsyncpa [#allocation6], 0 }
   0x4   :  { %13 = vsyncpa [#allocation6 + $0x1], 0  ;;  %s639_s9 = smov 0   ;;  %s641_s10 = smov 0  }
   0x5   :  { %s643_s11 = smov 0   ;;  %s645_s12 = smov 0  }
   0x6   :  { %s647_s13 = smov 0   ;;  %s649_s14 = smov 0  }
   0x7 LB: > { %s385_s15 = sadd.s32 4294967295, %s614_s14   ;;  %s386_s16 = sadd.s32 4294967294, %s614_s14   ;;  %s614_s14 = sphi %s649_s14, %s19_s14   ;;  %s610_s13 = sphi %s647_s13, %s881_s13   ;;  %s606_s12 = sphi %s645_s12, %s880_s12   ;;  %s602_s11 = sphi %s643_s11, %s879_s11   ;;  %s598_s10 = sphi %s641_s10, %s878_s10   ;;  %s594_s9 = sphi %s639_s9, %s877_s9  }
   0x8   : > { %s61_s17 = sadd.s32 1, %s602_s11  ;;  %p68_p0 = scmp.ne.s32.totalorder %s602_s11, %s598_s10 }
   0x9   : > { %p69_p1 = scmp.eq.s32.totalorder %s614_s14, 0  ;;  %p74_p2 = scmp.ne.s32.totalorder %s598_s10, %s594_s9 }
   0xa   : > { %p677_p3 = scmp.eq.s32.totalorder %s385_s15, 0  ;;  %p98_p4 = scmp.eq.s32.totalorder %s385_s15, 1 }
   0xb   : > { %p70_p5 = por %p69_p1, %p68_p0  ;;  %p104_p6 = scmp.eq.s32.totalorder %s386_s16, 1 }
   0xc   : > { %s866_s18 = scalar_select %p677_p3, 1, 0 }
   0xd   : > { %p683_p7 = por %p677_p3, %p74_p2  ;;  %p687_p8 = por %p98_p4, %p68_p0 }
   0xe   : > { %p691_p9 = por %p104_p6, %p74_p2  ;;  %p387_p10 = scmp.ge.s32.totalorder %s614_s14, 1 }
   0xf   : > { %s867_s19 = scalar_select %p683_p7, 1, 0 }
  0x10   : > { %s868_s20 = scalar_select %p687_p8, 1, 0 }
  0x11   : > { %s869_s21 = scalar_select %p691_p9, 1, 0 }
  0x12   : > { %p111_p11 = scmp.lt.s32.totalorder %s614_s14, 3  ;;  %p424_p1 = scmp.lt.s32.totalorder %s614_s14, 2 }
  0x13   : > { %s133_s23 = sand.u32 1, %s602_s11   ;;  %s31_s25 = sadd.s32 1, %s610_s13 }
  0x14   : > { %p698_p13 = pnand %p387_p10, %p111_p11  ;;  %p706_p0 = pnand %p424_p1, %p70_p5 }
  0x15   : > { %s390_s26 = sshll.u32 %s133_s23, 7  ;;  %p33_p4 = scmp.ge.s32.totalorder %s31_s25, 2 }
  0x16   : > { %p411_p7 = pneg %p698_p13  ;;  %s485_s29 = scalar_lea.hbm %s859_s0, 16 }
  0x17   : > { %p486_p6 = scmp.ne.s32.totalorder %s859_s0, %s485_s29  ;;  %p492_p5 = scmp.lt.u32.totalorder %s485_s29, %s859_s0 }
  0x18   : > { %p412_p2 = pnand %p411_p7, %p677_p3 }
  0x1a   : > { %p487_p10 = pneg %p412_p2 }
  0x1c   : > { %p488_p11 = pnand %p487_p10, %p486_p6 }
  0x1e   : > { %p489_p12 = pneg %p488_p11 }
  0x20   : > { %p494_p1 = pnand %p492_p5, %p489_p12 }
  0x22   : > { %497 = shalt.err (!%p494_p1)
}
  0x23   : > { %s616_s6 = smov [#allocation4]   ;;  %s883_s25 = smov (%p33_p4, %s31_s25), 0 }
  0x24   : > { %414 = dma.hbm_to_smem (!%p412_p2), %s859_s0, 16, %s616_s6, [#allocation7]  }
  0x25   : > { %s402_s15 = sshll.u32 %s610_s13, 11  ;;  %s56_s16 = ssub.s32 %s610_s13, %s883_s25 }
  0x26   : > { %s733_s29 = scalar_lea.hbm %s860_s1, %s402_s15  ;;  %p59_p7 = scmp.eq.s32.totalorder %s56_s16, 0 }
  0x27   : > { %s137_s30 = scalar_lea.vmem [#allocation8], %s390_s26  ;;  %s742_s5 = scalar_lea.sflag [#allocation5], %s133_s23 }
  0x28   : > { %s146_s3 = sshll.u32 %s137_s30, 4  ;;  %s498_s6 = scalar_lea.hbm %s733_s29, 2048  ;;  %s735_s3 = int_to_ptr.vmem [resolvable:$true] %s146_s3 }
  0x29   : > { %s740_s4 = scalar_select %p59_p7, %s602_s11, %s61_s17  }
  0x2a   : > { %p499_p12 = scmp.ne.s32.totalorder %s733_s29, %s498_s6  ;;  %p500_p2 = pneg %p706_p0 }
  0x2b   : > { %s503_s26 = scalar_lea.hbm %s860_s1, 4096  ;;  %p504_p10 = scmp.lt.u32.totalorder %s733_s29, %s860_s1 }
  0x2c   : > { %p501_p4 = pnand %p500_p2, %p499_p12  ;;  %p505_p11 = scmp.lt.u32.totalorder %s503_s26, %s498_s6 }
  0x2d   : > { %p507_p1 = scmp.lt.u32.totalorder %s498_s6, %s733_s29 }
  0x2e   : > { %p502_p6 = pneg %p501_p4  ;;  %p506_p5 = por %p505_p11, %p504_p10 }
  0x30   : > { %p508_p7 = por %p507_p1, %p506_p5 }
  0x32   : > { %p509_p9 = pnand %p508_p7, %p502_p6 }
  0x34   : > { %512 = shalt.err (!%p509_p9)
}
  0x35   : > { %s513_s17 = scalar_lea.vmem %s735_s3, 2048  ;;  %s617_s23 = smov [#allocation8]  }
  0x36   : > { %p514_p12 = scmp.ne.s32.totalorder %s735_s3, %s513_s17  ;;  %s518_s27 = sshll.u32 %s617_s23, 4  ;;  %s519_s27 = int_to_ptr.vmem [resolvable:$false] %s518_s27 }
  0x37   : > { %s520_s28 = scalar_lea.vmem %s519_s27, 4096  ;;  %p521_p3 = scmp.lt.s32.totalorder %s735_s3, %s519_s27 }
  0x38   : > { %p516_p4 = pnand %p514_p12, %p500_p2  ;;  %p522_p10 = scmp.lt.s32.totalorder %s520_s28, %s513_s17 }
  0x3a   : > { %p517_p8 = pneg %p516_p4  ;;  %p523_p11 = por %p522_p10, %p521_p3 }
  0x3c   : > { %p524_p5 = pnand %p523_p11, %p517_p8 }
  0x3e   : > { %527 = shalt.err (!%p524_p5)
}
  0x3f   : > { %s618_s30 = smov 1024   ;;  %s619_s6 = smov 64  }
  0x40   : > { %418 = dma.hbm_to_vmem [thread:$0]  (!%p706_p0), %s733_s29, 2048, %s735_s3, %s742_s5, %s618_s30, %s618_s30, %s619_s6  }
  0x41   : > { %158 = sbr.rel (%p698_p13) target bundleno = 414 (0x19e), region = 28  ;;  %p872_p9 = scmp.ne.s32.totalorder (!%p698_p13), %s866_s18, 0 }
  0x48   : > { %581 = dma.done.wait (%p872_p9), [#allocation7], 16  }
  0x49   : > { %583 = vsyncadd (%p872_p9), [#allocation7], 4294967280  ;;  %s777_s7 = sand.u32 1, %s598_s10   ;;  %p873_p3 = scmp.ne.s32.totalorder %s867_s19, 0 }
  0x4a   : > { %s395_s8 = sshll.u32 %s777_s7, 7  ;;  %s165_s26 = scalar_lea.sflag [#allocation5], %s777_s7 }
  0x4b   : > { %s781_s15 = scalar_lea.vmem [#allocation8], %s395_s8 }
  0x4c   : > { %585 = dma.done.wait (%p873_p3), %s165_s26, 2048  }
  0x4d   : > { %587 = vsyncadd (%p873_p3), %s165_s26, 4294965248 }
  0x4e   : > { %173 = sfence }
  0x4f   : > { %v198_v0 = vld [vmem:[%s781_s15] sm:$0xff]  ;;  %v202_v1 = vld [vmem:[%s781_s15 + $0x8] sm:$0xff]  ;;  %v206_v2 = vld [vmem:[%s781_s15 + $0x10] sm:$0xff]  ;;  %v620_v30 = vmov 0.0   ;;  %v244_v31 = vlaneseq  ;;  %vm255_vm0 = vcmask 130112   ;;  %vm258_vm1 = vcmask 122880  }
  0x50   : > { %v204_v3 = vadd.f32 %v202_v1, %v198_v0  ;;  %v210_v4 = vld [vmem:[%s781_s15 + $0x18] sm:$0xff]  ;;  %v199_v5 = vld [vmem:[%s781_s15 + $0x40] sm:$0xff]  ;;  %v203_v7 = vld [vmem:[%s781_s15 + $0x48] sm:$0xff]  ;;  %235 = vst [vmem:[#allocation3] sm:$0x1] %v620_v30  ;;  %s621_s18 = smov 1  }
  0x51   : > { %v207_v8 = vld [vmem:[%s781_s15 + $0x50] sm:$0xff]  ;;  %v214_v9 = vld [vmem:[%s781_s15 + $0x20] sm:$0xff]  ;;  %v205_v10 = vadd.f32 %v203_v7, %v199_v5  ;;  %v211_v12 = vld [vmem:[%s781_s15 + $0x58] sm:$0xff]  ;;  %v245_v32 = vand.u32 127, %v244_v31  ;;  %v247_v33 = vshrl.u32 %v244_v31, 7  ;;  %s622_s19 = smov 127  }
  0x52   : > { %v208_v6 = vadd.f32 %v206_v2, %v204_v3  ;;  %v218_v13 = vld [vmem:[%s781_s15 + $0x28] sm:$0xff]  ;;  %v215_v16 = vld [vmem:[%s781_s15 + $0x60] sm:$0xff]  ;;  %v222_v17 = vld [vmem:[%s781_s15 + $0x30] sm:$0xff]  ;;  %s263_s22 = sld [smem:[#allocation4]]  ;;  %s396_s24 = sld [smem:[#allocation4 + $0x1]] }
  0x53   : > { %v209_v14 = vadd.f32 %v207_v8, %v205_v10  ;;  %v219_v20 = vld [vmem:[%s781_s15 + $0x68] sm:$0xff]  ;;  %v226_v21 = vld [vmem:[%s781_s15 + $0x38] sm:$0xff]  ;;  %v223_v24 = vld [vmem:[%s781_s15 + $0x70] sm:$0xff]  ;;  %v250_v34 = vadd.s32 4294967288, %v245_v32  ;;  %v248_v36 = vsub.s32 %v245_v32, %v247_v33  ;;  %s397_s29 = sld [smem:[#allocation4 + $0x2]]  ;;  %s399_s3 = sshll.u32 %s606_s12, 4 }
  0x54   : > { %v212_v11 = vadd.f32 %v210_v4, %v208_v6  ;;  %v227_v27 = vld [vmem:[%s781_s15 + $0x78] sm:$0xff]  ;;  %s188_s5 = scalar_lea.vmem [#allocation9], %s777_s7  ;;  %s809_s27 = scalar_lea.hbm %s861_s2, %s399_s3 }
  0x55   : > { %v213_v18 = vadd.f32 %v211_v12, %v209_v14  ;;  %v253_v37 = vsub.s32 %v250_v34, %v247_v33  ;;  %s296_s16 = sshll.u32 %s188_s5, 4  ;;  %s284_s28 = scalar_lea.sflag [#allocation6], %s777_s7  ;;  %s811_s16 = int_to_ptr.vmem [resolvable:$true] %s296_s16 }
  0x56   : > { %v216_v15 = vadd.f32 %v214_v9, %v212_v11  ;;  %s528_s30 = scalar_lea.vmem %s811_s16, 16  ;;  %p874_p13 = scmp.ne.s32.totalorder %s868_s20, 0 }
  0x57   : > { %v217_v22 = vadd.f32 %v215_v16, %v213_v18  ;;  %p529_p8 = scmp.ne.s32.totalorder %s811_s16, %s528_s30  ;;  %s623_s12 = smov [#allocation9]  }
  0x58   : > { %v220_v19 = vadd.f32 %v218_v13, %v216_v15  ;;  %v264_v43 = vstv %s263_s22  ;;  %v267_v44 = vstv %s396_s24  ;;  %s532_s6 = sshll.u32 %s623_s12, 4  ;;  %s533_s6 = int_to_ptr.vmem [resolvable:$false] %s532_s6 }
  0x59   : > { %v221_v25 = vadd.f32 %v219_v20, %v217_v22  ;;  %v273_v47 = vstv %s397_s29  ;;  %p530_p0 = pnand %p529_p8, %p874_p13  ;;  %s534_s8 = scalar_lea.vmem %s533_s6, 32 }
  0x5a   : > { %v224_v23 = vadd.f32 %v222_v17, %v220_v19  ;;  %p535_p6 = scmp.lt.s32.totalorder %s811_s16, %s533_s6  ;;  %p536_p1 = scmp.lt.s32.totalorder %s534_s8, %s528_s30 }
  0x5b   : > { %v225_v28 = vadd.f32 %v223_v24, %v221_v25  ;;  %p531_p2 = pneg %p530_p0 }
  0x5c   : > { %v228_v26 = vadd.f32 %v226_v21, %v224_v23  ;;  %p537_p7 = por %p536_p1, %p535_p6 }
  0x5d   : > { %v229_v29 = vadd.f32 %v227_v27, %v225_v28 }
  0x5e   : > { %238 = vadd.xlane.f32.xlu0 %v228_v26  ;;  %p538_p12 = pnand %p537_p7, %p531_p2 }
  0x62   : > { %240 = vadd.xlane.f32.xlu0 %v229_v29 }
  0xeb   : > { %v239_v35 = vpop.xlane.xlu0 %238 }
  0xec   : > { %v249_v39 = vrot.slane %v239_v35, %v248_v36 }
  0xef   : > { %v241_v38 = vpop.xlane.xlu0 %240 }
  0xf0   : > { %v254_v40 = vrot.slane %v241_v38, %v253_v37 }
  0xf2   : > { %v256_v41 = vsel %vm255_vm0, %v254_v40, %v249_v39 }
  0xf3   : > { %259 = vst.msk [vmem:[#allocation3] sm:$0x1] %vm258_vm1, %v256_v41 }
  0xfa   : > { %v260_v42 = vld [vmem:[#allocation3] sm:$0x1] }
  0xfb   : > { %261 = vrot.lane.b32.xlu1 %v260_v42, %s621_s18  ;;  %v268_v48 = vmul.f32 %v267_v44, %v260_v42 }
  0xff   : > { %270 = vrot.lane.b32.xlu1 %v260_v42, %s622_s19 }
 0x16d   : > { %v262_v45 = vpop.permute.xlu1 %261 }
 0x16e   : > { %v265_v46 = vmul.f32 %v264_v43, %v262_v45 }
 0x170   : > { %v269_v50 = vadd.f32 %v268_v48, %v265_v46 }
 0x171   : > { %v271_v49 = vpop.permute.xlu1 %270 }
 0x172   : > { %v274_v51 = vmul.f32 %v273_v47, %v271_v49 }
 0x174   : > { %v275_v52 = vadd.f32 %v274_v51, %v269_v50 }
 0x176   : > { %v398_v53 = vmul.f32 -1.442695, %v275_v52 }
 0x178   : > { %481 = vpow2.f32 %v398_v53 }
 0x182   : > { %v482_v54 = vpop.eup %481 }
 0x183   : > { %v279_v55 = vadd.f32 1.0, %v482_v54 }
 0x185   : > { %483 = vrcp.f32 %v279_v55 }
 0x18f   : > { %v484_v56 = vpop.eup %483 }
 0x190   : > { %282 = vst.msk [vmem:[%s188_s5] sm:$0x1] %vm258_vm1, %v484_v56 }
 0x191   : > { %541 = shalt.err (!%p538_p12)
}
 0x192   : > { %s542_s7 = scalar_lea.hbm %s809_s27, 16  ;;  %s546_s18 = scalar_lea.hbm %s861_s2, 32 }
 0x193   : > { %p543_p4 = scmp.ne.s32.totalorder %s809_s27, %s542_s7  ;;  %p547_p5 = scmp.lt.u32.totalorder %s809_s27, %s861_s2 }
 0x194   : > { %p548_p9 = scmp.lt.u32.totalorder %s546_s18, %s542_s7  ;;  %p550_p8 = scmp.lt.u32.totalorder %s542_s7, %s809_s27 }
 0x195   : > { %p544_p10 = pnand %p543_p4, %p874_p13 }
 0x196   : > { %p549_p3 = por %p548_p9, %p547_p5 }
 0x197   : > { %p545_p11 = pneg %p544_p10 }
 0x198   : > { %p551_p0 = por %p550_p8, %p549_p3 }
 0x19a   : > { %p552_p2 = pnand %p551_p0, %p545_p11 }
 0x19c   : > { %555 = shalt.err (!%p552_p2)
}
 0x19d   : > { %409 = dma.vmem_to_hbm [thread:$0]  (%p874_p13), %s811_s16, 16, %s809_s27, %s284_s28  }
 0x19e PF: > { %s308_s24 = sand.u32 1, %s594_s9   ;;  %p875_p6 = scmp.ne.s32.totalorder %s869_s21, 0 }
 0x19f   : > { %p876_p1 = scmp.ge.s32.totalorder %s614_s14, 2  ;;  %s309_s29 = scalar_lea.sflag [#allocation6], %s308_s24 }
 0x1a1   : > { %p420_p7 = pnand %p876_p1, %p875_p6 }
 0x1a3   : > { %589 = dma.done.wait (!%p420_p7), %s309_s29, 16  }
 0x1a4   : > { %591 = vsyncadd (!%p420_p7), %s309_s29, 4294967280  ;;  %s19_s14 = sadd.s32 1, %s614_s14   ;;  %s877_s9 = smov %s598_s10 }
 0x1a5   : > { %p16_p12 = scmp.ge.s32.totalorder %s19_s14, 4   ;;  %s878_s10 = smov %s602_s11 }
 0x1a6   : > { %s879_s11 = smov %s740_s4  ;;  %s880_s12 = smov %s610_s13 }
 0x1a7   : > { %s881_s13 = smov %s883_s25  ;;  %18 = sbr.rel (!%p16_p12) target bundleno = 7 (0x7), region = 86 }
 0x1ae   :  { %313 = vsyncpa [#allocation5], 1 }
 0x1af   :  { %315 = vsyncpa [#allocation5 + $0x1], 1 }
 0x1b0   :  { %316 = vsyncpa [#allocation6], 1 }
 0x1b1   :  { %318 = vsyncpa [#allocation6 + $0x1], 1 }
 0x1b2   :  { %319 = vsyncpa [#allocation7], 1 }
 0x1b3   :  { %321 = vsyncpa [#allocation7 + $0x1], 1 }

</bundles_post_ra>
